<compile_context>
chip_gen: v7x
topology: tpu7x:2x2x1
jax: 0.10.0
libtpu: 0.0.40
codegen_flags: <defaults>
</compile_context>

<pallas_src>
import math
import jax
import jax.numpy as jnp
from jax.experimental import pallas as pl
from jax.experimental.pallas import tpu as pltpu


def _round_up(x, m):
    return ((x + m - 1) // m) * m


def ffn_kernel(x_ref, w1_ref, b1_ref, w2_ref, b2_ref, o_ref, acc_ref):
    # x_ref:  (TM, d_model)
    # w1_ref: (d_model, TFF)    b1_ref: (1, TFF)      [f32]
    # w2_ref: (TFF, d_model)    b2_ref: (1, d_model)  [f32]
    # acc_ref: (TM, d_model) f32 VMEM accumulator (persists across the d_ff axis)
    j = pl.program_id(1)

    @pl.when(j == 0)
    def _init():
        acc_ref[...] = jnp.zeros_like(acc_ref)

    x = x_ref[...]
    # First matmul on the MXU, bias + ReLU in f32.
    h = jnp.dot(x, w1_ref[...], preferred_element_type=jnp.float32)
    h = jnp.maximum(h + b1_ref[...], 0.0)
    # Dropout: identity (inference).
    # Second matmul; accumulate the partial d_ff contribution in f32.
    acc_ref[...] += jnp.dot(h.astype(w2_ref.dtype), w2_ref[...],
                            preferred_element_type=jnp.float32)

    @pl.when(j == pl.num_programs(1) - 1)
    def _finalize():
        o_ref[...] = (acc_ref[...] + b2_ref[...]).astype(o_ref.dtype)


def feed_forward(x, w1, b1, w2, b2, *, tile_rows=256, tile_ff=512,
                 compute_dtype=None):
    """x: (batch, len, d_model) -> (batch, len, d_model).

    w1: (d_model, d_ff), b1: (d_ff,), w2: (d_ff, d_model), b2: (d_model,).
    compute_dtype: optional dtype (e.g. jnp.bfloat16) for MXU operands.
    """
    B, L, d_model = x.shape
    d_ff = w1.shape[1]
    rows = B * L
    out_dtype = x.dtype

    if compute_dtype is not None:
        x = x.astype(compute_dtype)
        w1 = w1.astype(compute_dtype)
        w2 = w2.astype(compute_dtype)

    # Row tile: large enough to fill the MXU, multiple of 16 (bf16 packing),
    # shrunk for tiny inputs.  Rows are zero-padded to a tile multiple.
    tm = max(16, min(tile_rows, _round_up(rows, 16)))
    rows_padded = _round_up(rows, tm)

    # d_ff tile: largest of {tile_ff, 512, 256, 128} that divides d_ff and is
    # 128-aligned (lane dim); otherwise fall back to the full d_ff.
    tff = d_ff
    for cand in (tile_ff, 512, 256, 128):
        if cand <= d_ff and d_ff % cand == 0 and (cand % 128 == 0 or cand == d_ff):
            tff = cand
            break

    x2d = x.reshape(rows, d_model)
    if rows_padded != rows:
        x2d = jnp.pad(x2d, ((0, rows_padded - rows), (0, 0)))
    b1_2d = b1.reshape(1, d_ff).astype(jnp.float32)
    b2_2d = b2.reshape(1, d_model).astype(jnp.float32)

    grid = (rows_padded // tm, d_ff // tff)

    # Explicit VMEM budget (double-buffered pipelined blocks + f32 accumulator),
    # clamped to [32 MiB default scoped, 64 MiB v7x physical].
    xb = jnp.dtype(x2d.dtype).itemsize
    wb = jnp.dtype(w1.dtype).itemsize
    ob = jnp.dtype(out_dtype).itemsize
    vmem_est = (2 * tm * d_model * xb            # x tile
                + 2 * d_model * tff * wb         # W1 tile
                + 2 * tff * d_model * wb         # W2 tile
                + 2 * tff * 4 + 2 * d_model * 4  # biases
                + 2 * tm * d_model * ob          # out tile
                + tm * d_model * 4)              # accumulator
    vmem_limit = int(min(max(2 * vmem_est, 32 * 1024 * 1024), 64 * 1024 * 1024))

    cost = pl.CostEstimate(
        flops=int(4 * rows * d_model * d_ff),     # two matmuls of 2*M*K*N each
        transcendentals=0,
        bytes_accessed=int(rows * d_model * xb + d_model * d_ff * wb
                           + d_ff * d_model * wb + (d_ff + d_model) * 4
                           + rows * d_model * ob),
    )

    out2d = pl.pallas_call(
        ffn_kernel,
        out_shape=jax.ShapeDtypeStruct((rows_padded, d_model), out_dtype),
        grid_spec=pltpu.PrefetchScalarGridSpec(
            num_scalar_prefetch=0,
            grid=grid,
            in_specs=[
                pl.BlockSpec((tm, d_model), lambda i, j: (i, 0)),   # x rows tile
                pl.BlockSpec((d_model, tff), lambda i, j: (0, j)),  # W1 slab
                pl.BlockSpec((1, tff), lambda i, j: (0, j)),        # b1 slab
                pl.BlockSpec((tff, d_model), lambda i, j: (j, 0)),  # W2 slab
                pl.BlockSpec((1, d_model), lambda i, j: (0, 0)),    # b2
            ],
            out_specs=pl.BlockSpec((tm, d_model), lambda i, j: (i, 0)),
            scratch_shapes=[pltpu.VMEM((tm, d_model), jnp.float32)],
        ),
        compiler_params=pltpu.CompilerParams(
            dimension_semantics=("parallel", "arbitrary"),
            vmem_limit_bytes=vmem_limit,
        ),
        cost_estimate=cost,
    )(x2d, w1, b1_2d, w2, b2_2d)

    return out2d[:rows].reshape(B, L, d_model)


def xavier_uniform(key, fan_out, fan_in, dtype=jnp.float32):
    # Matches torch.nn.init.xavier_uniform_ on a (fan_out, fan_in) weight.
    bound = math.sqrt(6.0 / (fan_in + fan_out))
    return jax.random.uniform(key, (fan_out, fan_in), dtype, -bound, bound)


if __name__ == "__main__":
    # Small shapes consistent with the module: batch x len x d_model.
    # (d_model/d_ff chosen 128-aligned so the d_ff reduction + row padding paths
    #  are actually exercised: rows=21 -> padded to 32, d_ff=512 / tff=256 -> 2 steps.)
    batch, seq_len, d_model, d_ff = 3, 7, 128, 512

    key = jax.random.PRNGKey(0)
    k_x, k_w1, k_w2 = jax.random.split(key, 3)

    x = jax.random.normal(k_x, (batch, seq_len, d_model), jnp.float32)

    # PyTorch Linear stores weight as (d_out, d_in); xavier init, zero bias.
    w1_t = xavier_uniform(k_w1, d_ff, d_model)      # fc_1.weight : (d_ff, d_model)
    w2_t = xavier_uniform(k_w2, d_model, d_ff)      # fc_2.weight : (d_model, d_ff)
    b1 = jnp.zeros((d_ff,), jnp.float32)
    b2 = jnp.zeros((d_model,), jnp.float32)

    # Kernel consumes weights in (d_in, d_out) orientation: y = x @ W^T + b.
    w1 = w1_t.T   # (d_model, d_ff)
    w2 = w2_t.T   # (d_ff, d_model)

    # Pure-JAX reference.
    ref = jnp.maximum(x @ w1 + b1, 0.0) @ w2 + b2

    # f32 path (exact semantics).
    out = feed_forward(x, w1, b1, w2, b2, tile_ff=256)
    out = jax.block_until_ready(out)
    assert out.shape == (batch, seq_len, d_model)
    assert jnp.allclose(out, ref, atol=1e-4, rtol=1e-4), "f32 kernel mismatch"

    # bf16-operand path (MXU-friendly on v6e/v7x); f32 accumulation, looser check.
    out_bf16 = feed_forward(x, w1, b1, w2, b2, tile_ff=256,
                            compute_dtype=jnp.bfloat16)
    out_bf16 = jax.block_until_ready(out_bf16)
    assert jnp.allclose(out_bf16, ref, atol=1e-1, rtol=1e-1), "bf16 kernel mismatch"

    print("KERNEL_OK")
</pallas_src>

<mosaic_0001>
module attributes {stable_mosaic.version = 11 : i64} {
  func.func @ffn_kernel(%arg0: i32, %arg1: i32, %arg2: memref<32x128xf32, #tpu.memory_space<vmem>>, %arg3: memref<128x256xf32, #tpu.memory_space<vmem>>, %arg4: memref<1x256xf32, #tpu.memory_space<vmem>>, %arg5: memref<256x128xf32, #tpu.memory_space<vmem>>, %arg6: memref<1x128xf32, #tpu.memory_space<vmem>>, %arg7: memref<32x128xf32, #tpu.memory_space<vmem>>, %arg8: memref<32x128xf32, #tpu.memory_space<vmem>>) attributes {dimension_semantics = [#tpu.dimension_semantics<parallel>, #tpu.dimension_semantics<arbitrary>], iteration_bounds = array<i64: 1, 2>, scalar_prefetch = 0 : i64, scratch_operands = 1 : i64, tpu.core_type = #tpu.core_type<tc>, window_params = [{transform_indices = @transform_0, window_bounds = array<i64: 32, 128>}, {transform_indices = @transform_1, window_bounds = array<i64: 128, 256>}, {transform_indices = @transform_2, window_bounds = array<i64: 1, 256>}, {transform_indices = @transform_3, window_bounds = array<i64: 256, 128>}, {pipeline_mode = #tpu.pipeline_mode<synchronous>, transform_indices = @transform_4, window_bounds = array<i64: 1, 128>}, {transform_indices = @transform_5, window_bounds = array<i64: 32, 128>}]} {
    %c0_i32 = arith.constant 0 : i32
    %0 = arith.cmpi eq, %arg1, %c0_i32 : i32
    %1 = arith.extui %0 : i1 to i32
    %c0_i32_0 = arith.constant 0 : i32
    %2 = arith.cmpi ne, %1, %c0_i32_0 : i32
    scf.if %2 {
      %cst_15 = arith.constant 0.000000e+00 : f32
      %19 = vector.broadcast %cst_15 : f32 to vector<32x128xf32>
      %c0_16 = arith.constant 0 : index
      %c0_17 = arith.constant 0 : index
      %20 = vector.load %arg8[%c0_16, %c0_17] : memref<32x128xf32, #tpu.memory_space<vmem>>, vector<32x128xf32>
      tpu.vector_store %arg8[%c0_16, %c0_17], %19 {strides = array<i32>} : memref<32x128xf32, #tpu.memory_space<vmem>>, vector<32x128xf32>,
    } else {
    }
    %c0 = arith.constant 0 : index
    %c0_1 = arith.constant 0 : index
    %3 = vector.load %arg2[%c0, %c0_1] : memref<32x128xf32, #tpu.memory_space<vmem>>, vector<32x128xf32>
    %c0_2 = arith.constant 0 : index
    %c0_3 = arith.constant 0 : index
    %4 = vector.load %arg3[%c0_2, %c0_3] : memref<128x256xf32, #tpu.memory_space<vmem>>, vector<128x256xf32>
    %cst = arith.constant dense<0.000000e+00> : vector<32x256xf32>
    %5 = tpu.matmul %3, %4, %cst {dimension_numbers = #tpu.dot_dimension_numbers<[1], [0], [0], [1], [0, 0, 1, 1], [], []>} : vector<32x128xf32>, vector<128x256xf32>, vector<32x256xf32> -> vector<32x256xf32>
    %c0_4 = arith.constant 0 : index
    %c0_5 = arith.constant 0 : index
    %6 = vector.load %arg4[%c0_4, %c0_5] : memref<1x256xf32, #tpu.memory_space<vmem>>, vector<1x256xf32>
    %7 = vector.broadcast %6 : vector<1x256xf32> to vector<32x256xf32>
    %8 = arith.addf %5, %7 : vector<32x256xf32>
    %cst_6 = arith.constant 0.000000e+00 : f32
    %9 = vector.broadcast %cst_6 : f32 to vector<32x256xf32>
    %10 = arith.maximumf %8, %9 : vector<32x256xf32>
    %c0_7 = arith.constant 0 : index
    %c0_8 = arith.constant 0 : index
    %11 = vector.load %arg8[%c0_7, %c0_8] : memref<32x128xf32, #tpu.memory_space<vmem>>, vector<32x128xf32>
    %c0_9 = arith.constant 0 : index
    %c0_10 = arith.constant 0 : index
    %12 = vector.load %arg5[%c0_9, %c0_10] : memref<256x128xf32, #tpu.memory_space<vmem>>, vector<256x128xf32>
    %cst_11 = arith.constant dense<0.000000e+00> : vector<32x128xf32>
    %13 = tpu.matmul %10, %12, %cst_11 {dimension_numbers = #tpu.dot_dimension_numbers<[1], [0], [0], [1], [0, 0, 1, 1], [], []>} : vector<32x256xf32>, vector<256x128xf32>, vector<32x128xf32> -> vector<32x128xf32>
    %14 = arith.addf %11, %13 : vector<32x128xf32>
    %c0_12 = arith.constant 0 : index
    %c0_13 = arith.constant 0 : index
    %15 = vector.load %arg8[%c0_12, %c0_13] : memref<32x128xf32, #tpu.memory_space<vmem>>, vector<32x128xf32>
    tpu.vector_store %arg8[%c0_12, %c0_13], %14 {strides = array<i32>} : memref<32x128xf32, #tpu.memory_space<vmem>>, vector<32x128xf32>,
    %c1_i32 = arith.constant 1 : i32
    %16 = arith.cmpi eq, %arg1, %c1_i32 : i32
    %17 = arith.extui %16 : i1 to i32
    %c0_i32_14 = arith.constant 0 : i32
    %18 = arith.cmpi ne, %17, %c0_i32_14 : i32
    scf.if %18 {
      %c0_15 = arith.constant 0 : index
      %c0_16 = arith.constant 0 : index
      %19 = vector.load %arg8[%c0_15, %c0_16] : memref<32x128xf32, #tpu.memory_space<vmem>>, vector<32x128xf32>
      %c0_17 = arith.constant 0 : index
      %c0_18 = arith.constant 0 : index
      %20 = vector.load %arg6[%c0_17, %c0_18] : memref<1x128xf32, #tpu.memory_space<vmem>>, vector<1x128xf32>
      %21 = vector.broadcast %20 : vector<1x128xf32> to vector<32x128xf32>
      %22 = arith.addf %19, %21 : vector<32x128xf32>
      %c0_19 = arith.constant 0 : index
      %c0_20 = arith.constant 0 : index
      %23 = vector.load %arg7[%c0_19, %c0_20] : memref<32x128xf32, #tpu.memory_space<vmem>>, vector<32x128xf32>
      tpu.vector_store %arg7[%c0_19, %c0_20], %22 {strides = array<i32>} : memref<32x128xf32, #tpu.memory_space<vmem>>, vector<32x128xf32>,
    } else {
    }
    return
  }
  func.func @transform_0(%arg0: i32, %arg1: i32) -> (i32, i32) {
    %c0_i32 = arith.constant 0 : i32
    %c0_i32_0 = arith.constant 0 : i32
    return %arg0, %c0_i32 : i32, i32
  }
  func.func @transform_1(%arg0: i32, %arg1: i32) -> (i32, i32) {
    %c0_i32 = arith.constant 0 : i32
    %c0_i32_0 = arith.constant 0 : i32
    return %c0_i32, %arg1 : i32, i32
  }
  func.func @transform_2(%arg0: i32, %arg1: i32) -> (i32, i32) {
    %c0_i32 = arith.constant 0 : i32
    %c0_i32_0 = arith.constant 0 : i32
    return %c0_i32, %arg1 : i32, i32
  }
  func.func @transform_3(%arg0: i32, %arg1: i32) -> (i32, i32) {
    %c0_i32 = arith.constant 0 : i32
    %c0_i32_0 = arith.constant 0 : i32
    return %arg1, %c0_i32 : i32, i32
  }
  func.func @transform_4(%arg0: i32, %arg1: i32) -> (i32, i32) {
    %c0_i32 = arith.constant 0 : i32
    %c0_i32_0 = arith.constant 0 : i32
    %c0_i32_1 = arith.constant 0 : i32
    return %c0_i32, %c0_i32_0 : i32, i32
  }
  func.func @transform_5(%arg0: i32, %arg1: i32) -> (i32, i32) {
    %c0_i32 = arith.constant 0 : i32
    %c0_i32_0 = arith.constant 0 : i32
    return %arg0, %c0_i32 : i32, i32
  }
}

</mosaic_0001>

<bundles_post_ra>
// kernel: tpu_custom_call.1
= control target key start
LH: loop header
LB: loop body
LE: loop exit
PB: predicated region body
PF: predicated region fallthrough
CT: control target
= control target key end

     0   :  { %s1506_s0 = inlined_call_operand.hbm [shape: f32[32,128], index: 0, kind: input, shape index: {}]   ;;  %s1507_s1 = inlined_call_operand.hbm [shape: f32[128,512], index: 1, kind: input, shape index: {}]   ;;  %s1508_s2 = inlined_call_operand.vmem [shape: f32[1,512], index: 2, kind: input, shape index: {}]   ;;  %s1509_s3 = inlined_call_operand.hbm [shape: f32[512,128], index: 3, kind: input, shape index: {}]   ;;  %s1510_s4 = inlined_call_operand.vmem [shape: f32[1,128], index: 4, kind: input, shape index: {}]   ;;  %s1511_s5 = inlined_call_operand.hbm [shape: f32[32,128], index: 5, kind: output, shape index: {}]  }
   0x1   :  { %1518 = sst [smem:[#allocation13_spill]] %s1507_s1 }
   0x2   :  { %10 = vsyncpa [#allocation4], 0 }
   0x3   :  { %11 = vsyncpa [#allocation7], 0 }
   0x4   :  { %13 = vsyncpa [#allocation7 + $0x1], 0 }
   0x5   :  { %14 = vsyncpa [#allocation5], 0  ;;  %s1188_s18 = smov 0   ;;  %s1190_s19 = smov 0  }
   0x6   :  { %s1192_s20 = smov 0   ;;  %s1194_s21 = smov 0  }
   0x7   :  { %s1196_s22 = smov 0   ;;  %s1198_s23 = smov 0  }
   0x8 LB: > { %s29_s24 = sadd.s32 1, %s1139_s22  ;;  %s65_s25 = sadd.s32 1, %s1131_s20  ;;  %s1143_s23 = sphi %s1198_s23, %s20_s23   ;;  %s1139_s22 = sphi %s1196_s22, %s1535_s22   ;;  %s1135_s21 = sphi %s1194_s21, %s1534_s21   ;;  %s1131_s20 = sphi %s1192_s20, %s1533_s20   ;;  %s1127_s19 = sphi %s1190_s19, %s1532_s19   ;;  %s1123_s18 = sphi %s1188_s18, %s1531_s18  }
   0x9   : > { %p30_p0 = scmp.ge.s32.totalorder %s29_s24, 2  ;;  %p72_p1 = scmp.ne.s32.totalorder %s1131_s20, %s1127_s19 }
   0xa   : > { %p73_p2 = scmp.eq.s32.totalorder %s1143_s23, 0  ;;  %p908_p4 = scmp.lt.s32.totalorder %s1143_s23, 2 }
   0xb   : > { %s1537_s24 = smov (%p30_p0, %s29_s24), 0  ;;  %s220_s27 = sand.u32 1, %s1143_s23  }
   0xc   : > { %p74_p3 = por %p73_p2, %p72_p1  ;;  %s62_s26 = ssub.s32 %s1139_s22, %s1537_s24 }
   0xd   : > { %p63_p5 = scmp.eq.s32.totalorder %s62_s26, 0  ;;  %s222_s28 = sand.u32 1, %s1131_s20  }
   0xe   : > { %s774_s29 = sshll.u32 %s1139_s22, 8  ;;  %s1234_s6 = sshll.u32 %s222_s28, 8 }
   0xf   : > { %s1232_s30 = scalar_select %p63_p5, %s1131_s20, %s65_s25  }
  0x10   : > { %s1519_s1 = sld [smem:[#allocation13_spill]]  ;;  %p1241_p6 = pnand %p908_p4, %p74_p3 }
  0x11   : > { %s224_s11 = scalar_lea.vmem [#allocation6], %s1234_s6  ;;  %s1248_s13 = scalar_lea.sflag [#allocation7], %s220_s27 }
  0x12   : > { %s1520_s10 = scalar_select %p1241_p6, 1, 0 }
  0x13   : > { %s231_s12 = sshll.u32 %s224_s11, 4  ;;  %p1513_p8 = pneg %p1241_p6  ;;  %s1246_s12 = int_to_ptr.vmem [resolvable:$true] %s231_s12 }
  0x16   : > { %s1239_s9 = scalar_lea.hbm %s1519_s1, %s774_s29  ;;  %s976_s17 = scalar_lea.hbm %s1519_s1, 8192 }
  0x17   : > { %s971_s14 = scalar_lea.hbm %s1239_s9, 4096  ;;  %p977_p11 = scmp.lt.u32.totalorder %s1239_s9, %s1519_s1 }
  0x18   : > { %p972_p7 = scmp.ne.s32.totalorder %s1239_s9, %s971_s14  ;;  %p978_p12 = scmp.lt.u32.totalorder %s976_s17, %s971_s14 }
  0x19   : > { %p980_p0 = scmp.lt.u32.totalorder %s971_s14, %s1239_s9 }
  0x1a   : > { %p974_p9 = pnand %p1513_p8, %p972_p7  ;;  %p979_p13 = por %p978_p12, %p977_p11 }
  0x1c   : > { %p975_p10 = pneg %p974_p9  ;;  %p981_p1 = por %p980_p0, %p979_p13 }
  0x1e   : > { %p982_p2 = pnand %p981_p1, %p975_p10 }
  0x20   : > { %985 = shalt.err (!%p982_p2)
}
  0x21   : > { %s986_s27 = scalar_lea.vmem %s1246_s12, 4096  ;;  %s1145_s28 = smov [#allocation6]  }
  0x22   : > { %p987_p3 = scmp.ne.s32.totalorder %s1246_s12, %s986_s27  ;;  %s991_s29 = sshll.u32 %s1145_s28, 4  ;;  %s992_s29 = int_to_ptr.vmem [resolvable:$false] %s991_s29 }
  0x23   : > { %s993_s7 = scalar_lea.vmem %s992_s29, 8192  ;;  %p994_p7 = scmp.lt.s32.totalorder %s1246_s12, %s992_s29 }
  0x24   : > { %p989_p4 = pnand %p987_p3, %p1513_p8  ;;  %p995_p9 = scmp.lt.s32.totalorder %s993_s7, %s986_s27 }
  0x26   : > { %p990_p5 = pneg %p989_p4  ;;  %p996_p11 = por %p995_p9, %p994_p7 }
  0x28   : > { %p997_p12 = pnand %p996_p11, %p990_p5 }
  0x2a   : > { %1000 = shalt.err (!%p997_p12)
}
  0x2b   : > { %s1146_s8 = smov 512   ;;  %s1147_s11 = smov 256  }
  0x2c   : > { %s1148_s14 = smov 16   ;;  %s1277_s15 = sadd.s32 4294967295, %s1143_s23  }
  0x2d   : > { %903 = dma.hbm_to_vmem [thread:$0]  (!%p1241_p6), %s1239_s9, 4096, %s1246_s12, %s1248_s13, %s1146_s8, %s1147_s11, %s1148_s14  }
  0x2e   : > { %p78_p10 = scmp.ne.s32.totalorder %s1127_s19, %s1123_s18  ;;  %p1512_p13 = scmp.eq.s32.totalorder %s1277_s15, 0 }
  0x2f   : > { %p753_p0 = scmp.ge.s32.totalorder %s1143_s23, 1  ;;  %p188_p1 = scmp.lt.s32.totalorder %s1143_s23, 3 }
  0x30   : > { %p1286_p2 = por %p1512_p13, %p78_p10  ;;  %s1149_s9 = smov [#allocation3]  }
  0x31   : > { %p1290_p3 = pnand %p753_p0, %p188_p1  ;;  %s203_s12 = sshll.u32 %s1149_s9, 4  ;;  %s1294_s12 = int_to_ptr.vmem [resolvable:$true] %s203_s12 }
  0x32   : > { %s1521_s16 = scalar_select %p1286_p2, 1, 0 }
  0x33   : > { %s1522_s17 = scalar_select %p1290_p3, 1, 0 }
  0x34   : > { %p896_p4 = pneg %p1290_p3  ;;  %s775_s18 = sshll.u32 %s1139_s22, 12 }
  0x35   : > { %s1308_s28 = scalar_lea.hbm %s1509_s3, %s775_s18  ;;  %s253_s29 = scalar_lea.vmem [#allocation8], %s1234_s6 }
  0x36   : > { %p1301_p5 = pnand %p896_p4, %p1512_p13  ;;  %s260_s7 = sshll.u32 %s253_s29, 4  ;;  %s1311_s7 = int_to_ptr.vmem [resolvable:$true] %s260_s7 }
  0x37   : > { %s1001_s14 = scalar_lea.hbm %s1506_s0, 512 }
  0x38   : > { %p1002_p7 = scmp.ne.s32.totalorder %s1506_s0, %s1001_s14  ;;  %p1003_p9 = pneg %p1301_p5 }
  0x39   : > { %p1008_p10 = scmp.lt.u32.totalorder %s1001_s14, %s1506_s0 }
  0x3a   : > { %p1004_p11 = pnand %p1003_p9, %p1002_p7 }
  0x3c   : > { %p1005_p12 = pneg %p1004_p11 }
  0x3e   : > { %p1010_p0 = pnand %p1008_p10, %p1005_p12 }
  0x40   : > { %1013 = shalt.err (!%p1010_p0)
}
  0x41   : > { %s1014_s6 = scalar_lea.vmem %s1294_s12, 512  ;;  %p1022_p8 = scmp.lt.s32.totalorder %s1294_s12, %s1294_s12 }
  0x42   : > { %p1015_p1 = scmp.ne.s32.totalorder %s1294_s12, %s1014_s6  ;;  %p1023_p2 = scmp.lt.s32.totalorder %s1014_s6, %s1014_s6 }
  0x44   : > { %p1017_p4 = pnand %p1015_p1, %p1003_p9  ;;  %p1024_p3 = por %p1023_p2, %p1022_p8 }
  0x46   : > { %p1018_p13 = pneg %p1017_p4 }
  0x48   : > { %p1025_p6 = pnand %p1024_p3, %p1018_p13 }
  0x4a   : > { %1028 = shalt.err (!%p1025_p6)
}
  0x4b   : > { %s1150_s1 = smov 128   ;;  %s1151_s18 = smov 8  }
  0x4c   : > { %899 = dma.hbm_to_vmem [thread:$0]  (!%p1301_p5), %s1506_s0, 512, %s1294_s12, [#allocation4], %s1150_s1, %s1150_s1, %s1151_s18  }
  0x4d   : > { %s1029_s11 = scalar_lea.hbm %s1308_s28, 4096  ;;  %p1524_p6 = scmp.ne.s32.totalorder %s1520_s10, 0 }
  0x4e   : > { %p1030_p8 = scmp.ne.s32.totalorder %s1308_s28, %s1029_s11  ;;  %s1034_s26 = scalar_lea.hbm %s1509_s3, 8192 }
  0x4f   : > { %p1525_p13 = pneg %p1524_p6  ;;  %p1035_p7 = scmp.lt.u32.totalorder %s1308_s28, %s1509_s3 }
  0x50   : > { %p1036_p9 = scmp.lt.u32.totalorder %s1034_s26, %s1029_s11  ;;  %p1038_p12 = scmp.lt.u32.totalorder %s1029_s11, %s1308_s28 }
  0x51   : > { %p1032_p2 = pnand %p1030_p8, %p1525_p13 }
  0x52   : > { %p1037_p11 = por %p1036_p9, %p1035_p7 }
  0x53   : > { %p1033_p3 = pneg %p1032_p2 }
  0x54   : > { %p1039_p10 = por %p1038_p12, %p1037_p11 }
  0x56   : > { %p1040_p0 = pnand %p1039_p10, %p1033_p3 }
  0x58   : > { %1043 = shalt.err (!%p1040_p0)
}
  0x59   : > { %s1044_s12 = scalar_lea.vmem %s1311_s7, 4096  ;;  %p1526_p1 = pmov %p1525_p13 }
  0x5a   : > { %p1045_p5 = scmp.ne.s32.totalorder %s1311_s7, %s1044_s12  ;;  %s1152_s25 = smov [#allocation8]  }
  0x5b   : > { %s1049_s29 = sshll.u32 %s1152_s25, 4  ;;  %s1050_s29 = int_to_ptr.vmem [resolvable:$false] %s1049_s29 }
  0x5c   : > { %p1047_p4 = pnand %p1045_p5, %p1526_p1  ;;  %s1051_s8 = scalar_lea.vmem %s1050_s29, 8192 }
  0x5d   : > { %p1052_p13 = scmp.lt.s32.totalorder %s1311_s7, %s1050_s29  ;;  %p1053_p2 = scmp.lt.s32.totalorder %s1051_s8, %s1044_s12 }
  0x5e   : > { %p1048_p8 = pneg %p1047_p4 }
  0x5f   : > { %p1054_p7 = por %p1053_p2, %p1052_p13 }
  0x61   : > { %p1055_p9 = pnand %p1054_p7, %p1048_p8 }
  0x63   : > { %1058 = shalt.err (!%p1055_p9)
}
  0x64   : > { %906 = dma.hbm_to_vmem [thread:$0]  (!%p1524_p6), %s1308_s28, 4096, %s1311_s7, %s1248_s13, %s1150_s1, %s1150_s1, %s1151_s18  }
  0x65   : > { %p1527_p3 = scmp.ne.s32.totalorder %s1522_s17, 0 }
  0x66   : > { %p1528_p11 = scmp.eq.s32.totalorder (!%p1527_p3), %s1277_s15, 0 }
  0x67   : > { %272 = sbr.rel (%p1527_p3) target bundleno = 645 (0x285), region = 40 }
  0x6e   : > { %1110 = dma.done.wait (%p1528_p11), [#allocation4], 512   ;;  %p1529_p12 = pmov %p1528_p11 }
  0x6f   : > { %s278_s10 = sand.u32 1, %s1277_s15   ;;  %s280_s11 = sand.u32 1, %s1127_s19  }
  0x70   : > { %1112 = vsyncadd (%p1529_p12), [#allocation4], 4294966784  ;;  %s764_s14 = sshll.u32 %s280_s11, 8  ;;  %s279_s9 = scalar_lea.sflag [#allocation7], %s278_s10 }
  0x71   : > { %s1372_s26 = scalar_lea.vmem [#allocation6], %s764_s14  ;;  %p1530_p10 = scmp.ne.s32.totalorder %s1521_s16, 0 }
  0x73   : > { %1114 = dma.done.wait (%p1530_p10), %s279_s9, 8192  }
  0x74   : > { %1116 = vsyncadd (%p1530_p10), %s279_s9, 4294959104  ;;  %s766_s13 = sshll.u32 %s1135_s21, 1  ;;  %s1385_s1 = scalar_lea.vmem [#allocation8], %s764_s14 }
  0x75   : > { %p325_p6 = scmp.lt.s32.totalorder %s766_s13, 3  ;;  %p767_p0 = scmp.ne.s32.totalorder %s1135_s21, 0 }
  0x76   : > { %v1153_v0 = vmov (!%p767_p0), 0.0  }
  0x77   : > { %s1539_s13 = smov (!%p325_p6, %s766_s13), 3  ;;  %334 = sbr.rel (%p767_p0) target bundleno = 126 (0x7e), region = 56 }
  0x78   : > { %s327_s7 = scalar_lea.vmem %s1508_s2, %s1539_s13  ;;  %335 = vst [vmem:[#allocation2] sm:$0xff] (!%p767_p0), %v1153_v0  ;;  %336 = vst [vmem:[#allocation2 + $0x8] sm:$0xff] (!%p767_p0), %v1153_v0 }
  0x79   : > { %337 = vst [vmem:[#allocation2 + $0x10] sm:$0xff] (!%p767_p0), %v1153_v0  ;;  %338 = vst [vmem:[#allocation2 + $0x18] sm:$0xff] (!%p767_p0), %v1153_v0 }
  0x7e PF: > { %v344_v1 = vld [vmem:[%s1372_s26 + $0x8] sm:$0xff]  ;;  %v346_v2 = vld [vmem:[%s1372_s26 + $0x18] sm:$0xff]  ;;  %v343_v3 = vld [vmem:[%s1372_s26] sm:$0xff]  ;;  %v1154_v8 = vmov 0.0   ;;  %p768_p5 = scmp.ne.s32.totalorder %s1135_s21, 1 }
  0x7f   : > { %v820_v4 = vpack.c.bf16 %v346_v2, %v344_v1  ;;  %v345_v5 = vld [vmem:[%s1372_s26 + $0x10] sm:$0xff]  ;;  %v348_v6 = vld [vmem:[%s1372_s26 + $0x28] sm:$0xff]  ;;  %v350_v7 = vld [vmem:[%s1372_s26 + $0x38] sm:$0xff]  ;;  %451 = vmatprep.mubr.f32.mxu0 %v1154_v8 }
  0x80   : > { %v822_v9 = vpack.c.bf16 %v345_v5, %v343_v3  ;;  %v824_v10 = vpack.c.bf16 %v350_v7, %v348_v6  ;;  %v347_v11 = vld [vmem:[%s1372_s26 + $0x20] sm:$0xff]  ;;  %v349_v12 = vld [vmem:[%s1372_s26 + $0x30] sm:$0xff]  ;;  %v352_v13 = vld [vmem:[%s1372_s26 + $0x48] sm:$0xff] }
  0x81   : > { %821 = vmatprep.subr.bf16.mxu0 %v820_v4  ;;  %v354_v14 = vld [vmem:[%s1372_s26 + $0x58] sm:$0xff]  ;;  %v826_v15 = vpack.c.bf16 %v349_v12, %v347_v11  ;;  %v351_v17 = vld [vmem:[%s1372_s26 + $0x40] sm:$0xff]  ;;  %v353_v18 = vld [vmem:[%s1372_s26 + $0x50] sm:$0xff] }
  0x82   : > { %823 = vmatpush1.bf16.msra.mxu0 %v822_v9  ;;  %v828_v16 = vpack.c.bf16 %v354_v14, %v352_v13  ;;  %v356_v19 = vld [vmem:[%s1372_s26 + $0x68] sm:$0xff]  ;;  %v358_v20 = vld [vmem:[%s1372_s26 + $0x78] sm:$0xff]  ;;  %v830_v21 = vpack.c.bf16 %v353_v18, %v351_v17  ;;  %v355_v23 = vld [vmem:[%s1372_s26 + $0x60] sm:$0xff] }
  0x83   : > { %825 = vmatprep.subr.bf16.mxu0 %v824_v10  ;;  %v832_v22 = vpack.c.bf16 %v358_v20, %v356_v19  ;;  %v357_v24 = vld [vmem:[%s1372_s26 + $0x70] sm:$0xff]  ;;  %v360_v25 = vld [vmem:[%s1372_s26 + $0x88] sm:$0xff]  ;;  %v362_v26 = vld [vmem:[%s1372_s26 + $0x98] sm:$0xff] }
  0x84   : > { %v359_v27 = vld [vmem:[%s1372_s26 + $0x80] sm:$0xff]  ;;  %v361_v28 = vld [vmem:[%s1372_s26 + $0x90] sm:$0xff]  ;;  %v834_v29 = vpack.c.bf16 %v357_v24, %v355_v23  ;;  %v364_v30 = vld [vmem:[%s1372_s26 + $0xa8] sm:$0xff]  ;;  %v836_v35 = vpack.c.bf16 %v362_v26, %v360_v25 }
  0x85   : > { %v366_v31 = vld [vmem:[%s1372_s26 + $0xb8] sm:$0xff]  ;;  %v504_v32 = vld [vmem:[%s1385_s1 + $0x80] sm:$0xff]  ;;  %v505_v33 = vld [vmem:[%s1385_s1 + $0x88] sm:$0xff]  ;;  %v838_v46 = vpack.c.bf16 %v361_v28, %v359_v27 }
  0x86   : > { %827 = vmatpush1.bf16.msra.mxu0 %v826_v15  ;;  %v488_v34 = vld [vmem:[%s1385_s1] sm:$0xff]  ;;  %v852_v36 = vpack.c.bf16 %v505_v33, %v504_v32  ;;  %v489_v37 = vld [vmem:[%s1385_s1 + $0x8] sm:$0xff]  ;;  %v506_v38 = vld [vmem:[%s1385_s1 + $0x90] sm:$0xff]  ;;  %v840_v50 = vpack.c.bf16 %v366_v31, %v364_v30 }
  0x87   : > { %829 = vmatprep.subr.bf16.mxu0 %v828_v16  ;;  %v507_v39 = vld [vmem:[%s1385_s1 + $0x98] sm:$0xff]  ;;  %v854_v40 = vpack.c.bf16 %v489_v37, %v488_v34  ;;  %v490_v42 = vld [vmem:[%s1385_s1 + $0x10] sm:$0xff]  ;;  %v508_v44 = vld [vmem:[%s1385_s1 + $0xa0] sm:$0xff] }
  0x88   : > { %v856_v41 = vpack.c.bf16 %v507_v39, %v506_v38  ;;  %v491_v43 = vld [vmem:[%s1385_s1 + $0x18] sm:$0xff]  ;;  %853 = vmatprep.subr.bf16.mxu1 %v852_v36  ;;  %v509_v45 = vld [vmem:[%s1385_s1 + $0xa8] sm:$0xff]  ;;  %v363_v47 = vld [vmem:[%s1372_s26 + $0xa0] sm:$0xff]  ;;  %v377_v39 = vlaneseq }
  0x89   : > { %v365_v48 = vld [vmem:[%s1372_s26 + $0xb0] sm:$0xff]  ;;  %855 = vmatpush3.bf16.msra.mxu1 %v854_v40  ;;  %v858_v49 = vpack.c.bf16 %v491_v43, %v490_v42  ;;  %v368_v51 = vld [vmem:[%s1372_s26 + $0xc8] sm:$0xff]  ;;  %v860_v52 = vpack.c.bf16 %v509_v45, %v508_v44  ;;  %v492_v53 = vld [vmem:[%s1385_s1 + $0x20] sm:$0xff] }
  0x8a   : > { %831 = vmatpush1.bf16.msra.mxu0 %v830_v21  ;;  %857 = vmatprep.subr.bf16.mxu1 %v856_v41  ;;  %v493_v54 = vld [vmem:[%s1385_s1 + $0x28] sm:$0xff]  ;;  %v370_v55 = vld [vmem:[%s1372_s26 + $0xd8] sm:$0xff]  ;;  %v510_v56 = vld [vmem:[%s1385_s1 + $0xb0] sm:$0xff]  ;;  %v842_v58 = vpack.c.bf16 %v365_v48, %v363_v47  ;;  %v378_v40 = vshrl.u32 %v377_v39, 7 }
  0x8b   : > { %833 = vmatprep.subr.bf16.mxu0 %v832_v22  ;;  %v511_v57 = vld [vmem:[%s1385_s1 + $0xb8] sm:$0xff]  ;;  %v367_v59 = vld [vmem:[%s1372_s26 + $0xc0] sm:$0xff]  ;;  %v369_v60 = vld [vmem:[%s1372_s26 + $0xd0] sm:$0xff]  ;;  %v862_v61 = vpack.c.bf16 %v493_v54, %v492_v53  ;;  %v844_v62 = vpack.c.bf16 %v370_v55, %v368_v51 }
  0x8c   : > { %v372_v63 = vld [vmem:[%s1372_s26 + $0xe8] sm:$0xff]  ;;  %v864_v0 = vpack.c.bf16 %v511_v57, %v510_v56  ;;  %v494_v1 = vld [vmem:[%s1385_s1 + $0x30] sm:$0xff]  ;;  %v495_v2 = vld [vmem:[%s1385_s1 + $0x38] sm:$0xff]  ;;  %v846_v6 = vpack.c.bf16 %v369_v60, %v367_v59  ;;  %v379_v41 = vsub.s32 0, %v378_v40  ;;  %v383_v42 = vsub.s32 1, %v378_v40 }
  0x8d   : > { %859 = vmatpush3.bf16.msra.mxu1 %v858_v49  ;;  %v374_v3 = vld [vmem:[%s1372_s26 + $0xf8] sm:$0xff]  ;;  %v512_v4 = vld [vmem:[%s1385_s1 + $0xc0] sm:$0xff]  ;;  %v513_v5 = vld [vmem:[%s1385_s1 + $0xc8] sm:$0xff]  ;;  %v866_v9 = vpack.c.bf16 %v495_v2, %v494_v1 }
  0x8e   : > { %835 = vmatpush1.bf16.msra.mxu0 %v834_v29  ;;  %861 = vmatprep.subr.bf16.mxu1 %v860_v52  ;;  %v371_v7 = vld [vmem:[%s1372_s26 + $0xe0] sm:$0xff]  ;;  %v848_v10 = vpack.c.bf16 %v374_v3, %v372_v63  ;;  %v373_v11 = vld [vmem:[%s1372_s26 + $0xf0] sm:$0xff]  ;;  %v868_v12 = vpack.c.bf16 %v513_v5, %v512_v4  ;;  %v497_v14 = vld [vmem:[%s1385_s1 + $0x48] sm:$0xff] }
  0x8f   : > { %837 = vmatprep.subr.bf16.mxu0 %v836_v35  ;;  %v496_v13 = vld [vmem:[%s1385_s1 + $0x40] sm:$0xff]  ;;  %v514_v15 = vld [vmem:[%s1385_s1 + $0xd0] sm:$0xff]  ;;  %v515_v16 = vld [vmem:[%s1385_s1 + $0xd8] sm:$0xff]  ;;  %v850_v17 = vpack.c.bf16 %v373_v11, %v371_v7 }
  0x90   : > { %v870_v18 = vpack.c.bf16 %v497_v14, %v496_v13  ;;  %v872_v19 = vpack.c.bf16 %v515_v16, %v514_v15  ;;  %v498_v20 = vld [vmem:[%s1385_s1 + $0x50] sm:$0xff]  ;;  %v499_v21 = vld [vmem:[%s1385_s1 + $0x58] sm:$0xff]  ;;  %v516_v22 = vld [vmem:[%s1385_s1 + $0xe0] sm:$0xff] }
  0x91   : > { %863 = vmatpush3.bf16.msra.mxu1 %v862_v61  ;;  %v517_v23 = vld [vmem:[%s1385_s1 + $0xe8] sm:$0xff]  ;;  %v339_v24 = vld [vmem:[#allocation3] sm:$0xff]  ;;  %v874_v25 = vpack.c.bf16 %v499_v21, %v498_v20  ;;  %v341_v28 = vld [vmem:[#allocation3 + $0x10] sm:$0xff] }
  0x92   : > { %839 = vmatpush1.bf16.msra.mxu0 %v838_v46  ;;  %865 = vmatprep.subr.bf16.mxu1 %v864_v0  ;;  %v876_v26 = vpack.c.bf16 %v517_v23, %v516_v22  ;;  %v340_v27 = vld [vmem:[#allocation3 + $0x8] sm:$0xff]  ;;  %v342_v29 = vld [vmem:[#allocation3 + $0x18] sm:$0xff]  ;;  %v500_v30 = vld [vmem:[%s1385_s1 + $0x60] sm:$0xff] }
  0x93   : > { %841 = vmatprep.subr.bf16.mxu0 %v840_v50  ;;  %v501_v31 = vld [vmem:[%s1385_s1 + $0x68] sm:$0xff]  ;;  %v518_v33 = vld [vmem:[%s1385_s1 + $0xf0] sm:$0xff]  ;;  %v519_v34 = vld [vmem:[%s1385_s1 + $0xf8] sm:$0xff] }
  0x94   : > { %v878_v32 = vpack.c.bf16 %v501_v31, %v500_v30  ;;  %v880_v35 = vpack.c.bf16 %v519_v34, %v518_v33  ;;  %v502_v36 = vld [vmem:[%s1385_s1 + $0x70] sm:$0xff]  ;;  %v503_v37 = vld [vmem:[%s1385_s1 + $0x78] sm:$0xff] }
  0x95   : > { %867 = vmatpush3.bf16.msra.mxu1 %v866_v9  ;;  %v882_v38 = vpack.c.bf16 %v503_v37, %v502_v36  ;;  %v487_v22 = vld [vmem:[#allocation2 + $0x18] sm:$0xff] }
  0x96   : > { %843 = vmatpush1.bf16.msra.mxu0 %v842_v58  ;;  %869 = vmatprep.subr.bf16.mxu1 %v868_v12  ;;  %v485_v12 = vld [vmem:[#allocation2 + $0x8] sm:$0xff] }
  0x97   : > { %845 = vmatprep.subr.bf16.mxu0 %v844_v62 }
  0x99   : > { %871 = vmatpush3.bf16.msra.mxu1 %v870_v18 }
  0x9a   : > { %847 = vmatpush1.bf16.msra.mxu0 %v846_v6  ;;  %873 = vmatprep.subr.bf16.mxu1 %v872_v19  ;;  %v484_v6 = vld [vmem:[#allocation2] sm:$0xff] }
  0x9b   : > { %849 = vmatprep.subr.bf16.mxu0 %v848_v10 }
  0x9d   : > { %875 = vmatpush3.bf16.msra.mxu1 %v874_v25 }
  0x9e   : > { %851 = vmatpush1.bf16.msra.mxu0 %v850_v17  ;;  %877 = vmatprep.subr.bf16.mxu1 %v876_v26  ;;  %v486_v17 = vld [vmem:[#allocation2 + $0x10] sm:$0xff] }
  0xa1   : > { %452 = vmatmul.mubr.f32.vlgmr.msra.gmra.mrb[0].mxu0 %v339_v24  ;;  %879 = vmatpush3.bf16.msra.mxu1 %v878_v32 }
  0xa2   : > { %457 = vmatprep.mubr.f32.mxu0 %v1154_v8  ;;  %881 = vmatprep.subr.bf16.mxu1 %v880_v35 }
  0xa5   : > { %458 = vmatmul.mubr.f32.gmra.mrb[2].mxu0 %v340_v27  ;;  %883 = vmatpush3.bf16.msra.mxu1 %v882_v38  ;;  %v769_v27 = vld [vmem:[%s1510_s4] ss:$0 sm:$0xff] (!%p768_p5) }
  0xa6   : > { %463 = vmatprep.mubr.f32.mxu0 %v1154_v8 }
  0xa9   : > { %464 = vmatmul.mubr.f32.gmra.mrb[4].mxu0 %v341_v28 }
  0xaa   : > { %469 = vmatprep.mubr.f32.mxu0 %v1154_v8  ;;  %v375_v8 = vld [vmem:[%s327_s7] sm:$0x3] }
  0xab   : > { %v380_v43 = vrot.slane %v375_v8, %v379_v41  ;;  %v384_v44 = vrot.slane %v375_v8, %v383_v42 }
  0xad   : > { %470 = vmatmul.mubr.f32.gmra.mrb[6].mxu0 %v342_v29 }
 0x174   : > { %v453_v45 = vpop.f32.mrb[0].mxu0 }
 0x175   : > { %v454_v46 = vadd.f32 %v453_v45, %v380_v43  ;;  %v455_v47 = vpop.f32.mrb[1].mxu0 }
 0x176   : > { %v456_v48 = vadd.f32 %v455_v47, %v384_v44 }
 0x177   : > { %v476_v51 = vmax.f32 %v454_v46, 0.0 }
 0x178   : > { %v459_v49 = vpop.f32.mrb[2].mxu0  ;;  %v477_v50 = vmax.f32 %v456_v48, 0.0 }
 0x179   : > { %v460_v52 = vadd.f32 %v459_v49, %v380_v43  ;;  %v461_v53 = vpop.f32.mrb[3].mxu0 }
 0x17a   : > { %v462_v54 = vadd.f32 %v461_v53, %v384_v44  ;;  %584 = vmatprep.mubr.f32.mxu1 %v477_v50 }
 0x17b   : > { %585 = vmatmul.mubr.f32.vlgmr.msra.gmra.mrb[0].mxu1 %v476_v51  ;;  %v478_v57 = vmax.f32 %v460_v52, 0.0 }
 0x17c   : > { %v479_v55 = vmax.f32 %v462_v54, 0.0  ;;  %v465_v56 = vpop.f32.mrb[4].mxu0 }
 0x17d   : > { %v466_v58 = vadd.f32 %v465_v56, %v380_v43  ;;  %v467_v59 = vpop.f32.mrb[5].mxu0 }
 0x17e   : > { %v468_v60 = vadd.f32 %v467_v59, %v384_v44  ;;  %589 = vmatprep.mubr.f32.mxu1 %v479_v55 }
 0x17f   : > { %590 = vmatmul.mubr.f32.gmra.mrb[2].mxu1 %v478_v57  ;;  %v480_v63 = vmax.f32 %v466_v58, 0.0 }
 0x180   : > { %v481_v61 = vmax.f32 %v468_v60, 0.0  ;;  %v471_v62 = vpop.f32.mrb[6].mxu0 }
 0x181   : > { %v472_v0 = vadd.f32 %v471_v62, %v380_v43  ;;  %v473_v1 = vpop.f32.mrb[7].mxu0 }
 0x182   : > { %v474_v2 = vadd.f32 %v473_v1, %v384_v44  ;;  %594 = vmatprep.mubr.f32.mxu1 %v481_v61 }
 0x183   : > { %595 = vmatmul.mubr.f32.gmra.mrb[4].mxu1 %v480_v63  ;;  %v482_v4 = vmax.f32 %v472_v0, 0.0 }
 0x184   : > { %v483_v3 = vmax.f32 %v474_v2, 0.0 }
 0x186   : > { %599 = vmatprep.mubr.f32.mxu1 %v483_v3 }
 0x187   : > { %600 = vmatmul.mubr.f32.gmra.mrb[6].mxu1 %v482_v4 }
 0x24e   : > { %v808_v5 = vpop.f32.mrb[0].mxu1 }
 0x24f   : > { %v809_v7 = vpop.f32.mrb[1].mxu1 }
 0x250   : > { %v810_v9 = vadd.f32 %v809_v7, %v808_v5 }
 0x252   : > { %v605_v10 = vadd.f32 %v810_v9, %v484_v6  ;;  %v811_v11 = vpop.f32.mrb[2].mxu1 }
 0x253   : > { %v812_v13 = vpop.f32.mrb[3].mxu1 }
 0x254   : > { %609 = vst [vmem:[#allocation2] sm:$0xff] %v605_v10  ;;  %v813_v14 = vadd.f32 %v812_v13, %v811_v11 }
 0x256   : > { %v606_v15 = vadd.f32 %v813_v14, %v485_v12  ;;  %v814_v16 = vpop.f32.mrb[4].mxu1 }
 0x257   : > { %v815_v18 = vpop.f32.mrb[5].mxu1 }
 0x258   : > { %610 = vst [vmem:[#allocation2 + $0x8] sm:$0xff] %v606_v15  ;;  %v816_v19 = vadd.f32 %v815_v18, %v814_v16 }
 0x25a   : > { %v607_v20 = vadd.f32 %v816_v19, %v486_v17  ;;  %v817_v21 = vpop.f32.mrb[6].mxu1  ;;  %616 = sbr.rel (%p768_p5) target bundleno = 619 (0x26b), region = 60 }
 0x25b   : > { %v818_v23 = vpop.f32.mrb[7].mxu1  ;;  %v617_v26 = vld [vmem:[#allocation2] sm:$0xff] (!%p768_p5) }
 0x25c   : > { %611 = vst [vmem:[#allocation2 + $0x10] sm:$0xff] %v607_v20  ;;  %v819_v24 = vadd.f32 %v818_v23, %v817_v21  ;;  %v628_v29 = vadd.f32 (!%p768_p5), %v769_v27, %v617_v26 }
 0x25e   : > { %v608_v25 = vadd.f32 %v819_v24, %v487_v22  ;;  %632 = vst [vmem:[#allocation9] sm:$0xff] (!%p768_p5), %v628_v29 }
 0x25f   : > { %v618_v28 = vld [vmem:[#allocation2 + $0x8] sm:$0xff] (!%p768_p5) }
 0x260   : > { %612 = vst [vmem:[#allocation2 + $0x18] sm:$0xff] %v608_v25  ;;  %v629_v30 = vadd.f32 (!%p768_p5), %v769_v27, %v618_v28 }
 0x262   : > { %633 = vst [vmem:[#allocation9 + $0x8] sm:$0xff] %v629_v30 }
 0x263   : > { %v619_v31 = vld [vmem:[#allocation2 + $0x10] sm:$0xff] }
 0x264   : > { %v630_v33 = vadd.f32 %v769_v27, %v619_v31 }
 0x266   : > { %634 = vst [vmem:[#allocation9 + $0x10] sm:$0xff] %v630_v33 }
 0x267   : > { %v620_v32 = vld [vmem:[#allocation2 + $0x18] sm:$0xff] }
 0x268   : > { %v631_v34 = vadd.f32 %v769_v27, %v620_v32 }
 0x26a   : > { %635 = vst [vmem:[#allocation9 + $0x18] sm:$0xff] %v631_v34 }
 0x26b PF: > { %p910_p1 = scmp.eq.s32.totalorder %s1277_s15, 1  ;;  %s1155_s21 = smov [#allocation9]  }
 0x26c   : > { %s645_s12 = sshll.u32 %s1155_s21, 4  ;;  %s646_s12 = int_to_ptr.vmem [resolvable:$true] %s645_s12 }
 0x26d   : > { %s1059_s25 = scalar_lea.vmem %s646_s12, 512  ;;  %p1066_p2 = scmp.lt.s32.totalorder %s646_s12, %s646_s12 }
 0x26e   : > { %p1060_p4 = scmp.ne.s32.totalorder %s646_s12, %s1059_s25  ;;  %p1067_p7 = scmp.lt.s32.totalorder %s1059_s25, %s1059_s25 }
 0x270   : > { %p1061_p8 = pnand %p1060_p4, %p910_p1  ;;  %p1068_p9 = por %p1067_p7, %p1066_p2 }
 0x272   : > { %p1062_p13 = pneg %p1061_p8 }
 0x274   : > { %p1069_p3 = pnand %p1068_p9, %p1062_p13 }
 0x276   : > { %1072 = shalt.err (!%p1069_p3)
}
 0x277   : > { %s1073_s10 = scalar_lea.hbm %s1511_s5, 512 }
 0x278   : > { %p1074_p11 = scmp.ne.s32.totalorder %s1511_s5, %s1073_s10  ;;  %p1079_p6 = scmp.lt.u32.totalorder %s1073_s10, %s1511_s5 }
 0x27a   : > { %p1075_p12 = pnand %p1074_p11, %p910_p1 }
 0x27c   : > { %p1076_p10 = pneg %p1075_p12 }
 0x27e   : > { %p1081_p0 = pnand %p1079_p6, %p1076_p10 }
 0x280   : > { %1084 = shalt.err (!%p1081_p0)
}
 0x281   : > { %s1156_s13 = smov 128   ;;  %s1157_s17 = smov 8  }
 0x282   : > { %893 = dma.vmem_to_hbm [thread:$0]  (%p910_p1), %s646_s12, 512, %s1511_s5, [#allocation5], %s1156_s13, %s1156_s13, %s1157_s17  }
 0x283   : > { %1118 = dma.done.wait (%p910_p1), [#allocation5], 512  }
 0x284   : > { %1120 = vsyncadd (%p910_p1), [#allocation5], 4294966784 }
 0x285 PF: > { %s20_s23 = sadd.s32 1, %s1143_s23   ;;  %s1531_s18 = smov %s1127_s19 }
 0x286   : > { %p17_p5 = scmp.ge.s32.totalorder %s20_s23, 4   ;;  %s1532_s19 = smov %s1131_s20 }
 0x287   : > { %s1533_s20 = smov %s1232_s30  ;;  %s1534_s21 = smov %s1139_s22 }
 0x288   : > { %s1535_s22 = smov %s1537_s24  ;;  %19 = sbr.rel (!%p17_p5) target bundleno = 8 (0x8), region = 106 }
 0x28f   :  { %661 = vsyncpa [#allocation4], 1 }
 0x290   :  { %663 = vsyncpa [#allocation4 + $0x1], 1 }
 0x291   :  { %664 = vsyncpa [#allocation7], 1 }
 0x292   :  { %666 = vsyncpa [#allocation7 + $0x1], 1 }
 0x293   :  { %667 = vsyncpa [#allocation5], 1 }
 0x294   :  { %669 = vsyncpa [#allocation5 + $0x1], 1 }

</bundles_post_ra>
